<compile_context>
chip_gen: v7x
topology: tpu7x:2x2x1
jax: 0.10.0
libtpu: 0.0.40
codegen_flags: <defaults>
</compile_context>

<pallas_src>
import functools

import jax
import jax.numpy as jnp
from jax.experimental import pallas as pl
from jax.experimental.pallas import tpu as pltpu

K_FEATURES = 1024          # fixed by the module: nn.Linear(1024, 1)
NUM_K_CHUNKS = 4
CHUNK_K = K_FEATURES // NUM_K_CHUNKS   # 256 lanes per chunk


def _round_up(n, m):
    return ((n + m - 1) // m) * m


def dhead_kernel(x_ref, w_ref, b_ref, o_ref):
    # x_ref: [TB, K] (VMEM, caller dtype), w_ref: [1, K] f32 (VMEM, resident),
    # b_ref: [1] f32 (SMEM), o_ref: [TB, 1] f32.
    tb = x_ref.shape[0]
    acc = jnp.zeros((tb, 1), jnp.float32)
    # Chunked K reduction: only a [TB, CHUNK_K] product is live at a time
    # (no full-tile astype copy, no full-tile product).  Static Python loop
    # over 4 lane-aligned slices -> fully unrolled, LLO-visible.
    for c in range(NUM_K_CHUNKS):
        xc = x_ref[:, c * CHUNK_K:(c + 1) * CHUNK_K]   # [TB, 256], input dtype
        wc = w_ref[:, c * CHUNK_K:(c + 1) * CHUNK_K]   # [1, 256], f32
        # dtype promotion happens inside the multiply (bf16*f32 -> f32):
        # VPU multiply + XLU lane reduction; no MXU for a 1-column output.
        acc = acc + jnp.sum(xc * wc, axis=-1, keepdims=True)
    y = acc + b_ref[0]                                 # scalar bias from SMEM
    o_ref[...] = jax.nn.sigmoid(y).astype(o_ref.dtype)


@functools.partial(jax.jit, static_argnames=("block_b",))
def dhead_forward(x, weight, bias, *, block_b=512):
    """x: [B, 1024] (f32 or bf16), weight: [1, 1024], bias: [1] -> [B, 1] f32.

    block_b: max rows per batch tile.  Default 512 is safe on every
    generation (v5e 16 MiB scoped-VMEM default included); on v7x with large
    B, block_b=2048 amortizes the per-grid-step overhead further.
    """
    B, K = x.shape
    assert K == K_FEATURES

    # --- Grid-length-aware tile selection --------------------------------
    # Round the batch to a multiple of 128: covers (8,128)/(16,128)/(32,128)
    # sublane packing for f32 / bf16 / int8 inputs.
    B_min = _round_up(B, 128)
    # Aim for >= 4 grid steps so double-buffering overlaps DMA with compute
    # and v7x's two TensorCores both get batch tiles; cap at block_b.
    TB = min(block_b, max(128, _round_up(B_min // 4, 128)))
    B_pad = _round_up(B_min, TB)
    if B_pad != B:
        x = jnp.pad(x, ((0, B_pad - B), (0, 0)))   # padded rows sliced off below

    # Stream x in its native dtype (bf16 halves HBM traffic); weight is cast
    # once here and stays VMEM-resident across all batch tiles.
    w_f32 = weight.astype(jnp.float32).reshape(1, K)
    b_f32 = bias.astype(jnp.float32).reshape(1)

    grid = (B_pad // TB,)
    itemsize = jnp.dtype(x.dtype).itemsize
    cost = pl.CostEstimate(
        flops=2 * B_pad * K,
        transcendentals=B_pad,
        bytes_accessed=B_pad * K * itemsize + K * 4 + B_pad * 4,
    )

    out = pl.pallas_call(
        dhead_kernel,
        out_shape=jax.ShapeDtypeStruct((B_pad, 1), jnp.float32),
        grid_spec=pltpu.PrefetchScalarGridSpec(
            num_scalar_prefetch=0,
            grid=grid,
            in_specs=[
                pl.BlockSpec((TB, K), lambda i: (i, 0)),            # x: tiled over B
                pl.BlockSpec((1, K), lambda i: (0, 0)),             # weight: resident
                pl.BlockSpec(memory_space=pltpu.MemorySpace.SMEM),  # bias scalar
            ],
            out_specs=pl.BlockSpec((TB, 1), lambda i: (i, 0)),
        ),
        compiler_params=pltpu.CompilerParams(
            dimension_semantics=("parallel",),
            vmem_limit_bytes=32 * 1024 * 1024,
        ),
        cost_estimate=cost,
    )(x, w_f32, b_f32)

    if B_pad != B:
        out = out[:B]
    return out


if __name__ == "__main__":
    # Deterministic parameter init (synthetic; mirrors nn.Linear(1024, 1) shapes).
    key = jax.random.PRNGKey(0)
    xkey, wkey, bkey = jax.random.split(key, 3)
    bound = 1.0 / (K_FEATURES ** 0.5)
    weight = jax.random.uniform(wkey, (1, K_FEATURES), jnp.float32, -bound, bound)
    bias = jax.random.uniform(bkey, (1,), jnp.float32, -bound, bound)

    # Small example input consistent with the forward: batch=8, features=1024.
    x = jax.random.normal(xkey, (8, K_FEATURES), jnp.float32)
    out = jax.block_until_ready(dhead_forward(x, weight, bias))
    ref = jax.nn.sigmoid(x @ weight.T + bias)
    assert out.shape == (8, 1)
    assert jnp.allclose(out, ref, atol=1e-5, rtol=1e-5)

    # Batch that is not a multiple of the tile (padding / slicing path).
    x2 = jax.random.normal(jax.random.PRNGKey(1), (13, K_FEATURES), jnp.float32)
    out2 = jax.block_until_ready(dhead_forward(x2, weight, bias))
    ref2 = jax.nn.sigmoid(x2 @ weight.T + bias)
    assert out2.shape == (13, 1)
    assert jnp.allclose(out2, ref2, atol=1e-5, rtol=1e-5)

    # bf16 activation streaming path (half the HBM bytes).
    x3 = jax.random.normal(jax.random.PRNGKey(2), (16, K_FEATURES), jnp.float32)
    out3 = jax.block_until_ready(
        dhead_forward(x3.astype(jnp.bfloat16), weight, bias))
    ref3 = jax.nn.sigmoid(x3 @ weight.T + bias)
    assert out3.shape == (16, 1)
    assert jnp.allclose(out3, ref3, atol=2e-2, rtol=2e-2)

    print("KERNEL_OK")
</pallas_src>

<mosaic_0001>
module attributes {stable_mosaic.version = 11 : i64} {
  func.func @dhead_kernel(%arg0: i32, %arg1: memref<128x1024xf32, #tpu.memory_space<vmem>>, %arg2: memref<1x1024xf32, #tpu.memory_space<vmem>>, %arg3: memref<1xf32, #tpu.memory_space<smem>>, %arg4: memref<128x1xf32, #tpu.memory_space<vmem>>) attributes {dimension_semantics = [#tpu.dimension_semantics<parallel>], iteration_bounds = array<i64: 1>, scalar_prefetch = 0 : i64, scratch_operands = 0 : i64, tpu.core_type = #tpu.core_type<tc>, window_params = [{transform_indices = @transform_0, window_bounds = array<i64: 128, 1024>}, {pipeline_mode = #tpu.pipeline_mode<synchronous>, transform_indices = @transform_1, window_bounds = array<i64: 1, 1024>}, {transform_indices = @transform_2, window_bounds = array<i64: 1>}, {transform_indices = @transform_3, window_bounds = array<i64: 128, 1>}]} {
    %cst = arith.constant 0.000000e+00 : f32
    %0 = vector.broadcast %cst : f32 to vector<128x1xf32>
    %c0 = arith.constant 0 : index
    %c0_0 = arith.constant 0 : index
    %1 = vector.load %arg1[%c0, %c0_0] : memref<128x1024xf32, #tpu.memory_space<vmem>>, vector<128x256xf32>
    %c0_1 = arith.constant 0 : index
    %c0_2 = arith.constant 0 : index
    %2 = vector.load %arg2[%c0_1, %c0_2] : memref<1x1024xf32, #tpu.memory_space<vmem>>, vector<1x256xf32>
    %3 = vector.broadcast %2 : vector<1x256xf32> to vector<128x256xf32>
    %4 = arith.mulf %1, %3 : vector<128x256xf32>
    %cst_3 = arith.constant dense<0.000000e+00> : vector<128xf32>
    %5 = vector.multi_reduction <add>, %4, %cst_3 [1] : vector<128x256xf32> to vector<128xf32>
    %6 = vector.shape_cast %5 : vector<128xf32> to vector<128x1xf32>
    %7 = arith.addf %0, %6 : vector<128x1xf32>
    %c0_4 = arith.constant 0 : index
    %c256 = arith.constant 256 : index
    %8 = vector.load %arg1[%c0_4, %c256] : memref<128x1024xf32, #tpu.memory_space<vmem>>, vector<128x256xf32>
    %c0_5 = arith.constant 0 : index
    %c256_6 = arith.constant 256 : index
    %9 = vector.load %arg2[%c0_5, %c256_6] : memref<1x1024xf32, #tpu.memory_space<vmem>>, vector<1x256xf32>
    %10 = vector.broadcast %9 : vector<1x256xf32> to vector<128x256xf32>
    %11 = arith.mulf %8, %10 : vector<128x256xf32>
    %cst_7 = arith.constant dense<0.000000e+00> : vector<128xf32>
    %12 = vector.multi_reduction <add>, %11, %cst_7 [1] : vector<128x256xf32> to vector<128xf32>
    %13 = vector.shape_cast %12 : vector<128xf32> to vector<128x1xf32>
    %14 = arith.addf %7, %13 : vector<128x1xf32>
    %c0_8 = arith.constant 0 : index
    %c512 = arith.constant 512 : index
    %15 = vector.load %arg1[%c0_8, %c512] : memref<128x1024xf32, #tpu.memory_space<vmem>>, vector<128x256xf32>
    %c0_9 = arith.constant 0 : index
    %c512_10 = arith.constant 512 : index
    %16 = vector.load %arg2[%c0_9, %c512_10] : memref<1x1024xf32, #tpu.memory_space<vmem>>, vector<1x256xf32>
    %17 = vector.broadcast %16 : vector<1x256xf32> to vector<128x256xf32>
    %18 = arith.mulf %15, %17 : vector<128x256xf32>
    %cst_11 = arith.constant dense<0.000000e+00> : vector<128xf32>
    %19 = vector.multi_reduction <add>, %18, %cst_11 [1] : vector<128x256xf32> to vector<128xf32>
    %20 = vector.shape_cast %19 : vector<128xf32> to vector<128x1xf32>
    %21 = arith.addf %14, %20 : vector<128x1xf32>
    %c0_12 = arith.constant 0 : index
    %c768 = arith.constant 768 : index
    %22 = vector.load %arg1[%c0_12, %c768] : memref<128x1024xf32, #tpu.memory_space<vmem>>, vector<128x256xf32>
    %c0_13 = arith.constant 0 : index
    %c768_14 = arith.constant 768 : index
    %23 = vector.load %arg2[%c0_13, %c768_14] : memref<1x1024xf32, #tpu.memory_space<vmem>>, vector<1x256xf32>
    %24 = vector.broadcast %23 : vector<1x256xf32> to vector<128x256xf32>
    %25 = arith.mulf %22, %24 : vector<128x256xf32>
    %cst_15 = arith.constant dense<0.000000e+00> : vector<128xf32>
    %26 = vector.multi_reduction <add>, %25, %cst_15 [1] : vector<128x256xf32> to vector<128xf32>
    %27 = vector.shape_cast %26 : vector<128xf32> to vector<128x1xf32>
    %28 = arith.addf %21, %27 : vector<128x1xf32>
    %c0_16 = arith.constant 0 : index
    %29 = memref.load %arg3[%c0_16] : memref<1xf32, #tpu.memory_space<smem>>
    %30 = vector.broadcast %29 : f32 to vector<128x1xf32>
    %31 = arith.addf %28, %30 : vector<128x1xf32>
    %32 = arith.negf %31 : vector<128x1xf32>
    %33 = math.exp %32 : vector<128x1xf32>
    %cst_17 = arith.constant 1.000000e+00 : f32
    %34 = vector.broadcast %cst_17 : f32 to vector<128x1xf32>
    %35 = arith.addf %34, %33 : vector<128x1xf32>
    %36 = arith.divf %34, %35 : vector<128x1xf32>
    %c0_18 = arith.constant 0 : index
    %c0_19 = arith.constant 0 : index
    %37 = vector.load %arg4[%c0_18, %c0_19] : memref<128x1xf32, #tpu.memory_space<vmem>>, vector<128x1xf32>
    tpu.vector_store %arg4[%c0_18, %c0_19], %36 {strides = array<i32>} : memref<128x1xf32, #tpu.memory_space<vmem>>, vector<128x1xf32>,
    return
  }
  func.func @transform_0(%arg0: i32) -> (i32, i32) {
    %c0_i32 = arith.constant 0 : i32
    %c0_i32_0 = arith.constant 0 : i32
    return %arg0, %c0_i32 : i32, i32
  }
  func.func @transform_1(%arg0: i32) -> (i32, i32) {
    %c0_i32 = arith.constant 0 : i32
    %c0_i32_0 = arith.constant 0 : i32
    %c0_i32_1 = arith.constant 0 : i32
    return %c0_i32, %c0_i32_0 : i32, i32
  }
  func.func @transform_2(%arg0: i32) -> i32 {
    %c0_i32 = arith.constant 0 : i32
    %c0_i32_0 = arith.constant 0 : i32
    return %c0_i32 : i32
  }
  func.func @transform_3(%arg0: i32) -> (i32, i32) {
    %c0_i32 = arith.constant 0 : i32
    %c0_i32_0 = arith.constant 0 : i32
    return %arg0, %c0_i32 : i32, i32
  }
}

</mosaic_0001>

<bundles_post_ra>
// kernel: dhead_forward.1
= control target key start
LH: loop header
LB: loop body
LE: loop exit
PB: predicated region body
PF: predicated region fallthrough
CT: control target
= control target key end

     0   :  { %v49_v0 = vlaneseq  ;;  %vm689_vm0 = vcmask 7168   ;;  %s1669_s1 = inlined_call_operand.vmem [shape: f32[1,1024], index: 1, kind: input, shape index: {}]   ;;  %s1670_s0 = inlined_call_operand.vmem [shape: f32[128,1024], index: 0, kind: input, shape index: {}]   ;;  %s1671_s2 = inlined_call_operand.<no memory space> [shape: f32[1], index: 2, kind: input, shape index: {}]   ;;  %s1672_s3 = inlined_call_operand.vmem [shape: f32[128,1], index: 3, kind: output, shape index: {}]  }
   0x1   :  { %v47_v2 = vld [vmem:[%s1669_s1] sm:$0x3]  ;;  %v20_v4 = vld [vmem:[%s1670_s0 + $0x88] sm:$0xff]  ;;  %v187_v61 = vld [vmem:[%s1669_s1 + $0x2] sm:$0x3] }
   0x2   :  { %v50_v1 = vshrl.u32 %v49_v0, 7  ;;  %v19_v3 = vld [vmem:[%s1670_s0 + $0x80] sm:$0xff]  ;;  %v16_v8 = vld [vmem:[%s1670_s0 + $0x8] sm:$0xff] }
   0x3   :  { %v15_v7 = vld [vmem:[%s1670_s0] sm:$0xff]  ;;  %v22_v12 = vld [vmem:[%s1670_s0 + $0xc8] sm:$0xff] }
   0x4   :  { %v819_v5 = vsub.s32 0, %v50_v1  ;;  %v821_v6 = vsub.s32 1, %v50_v1  ;;  %v21_v9 = vld [vmem:[%s1670_s0 + $0xc0] sm:$0xff]  ;;  %v18_v14 = vld [vmem:[%s1670_s0 + $0x48] sm:$0xff] }
   0x5   :  { %v17_v13 = vld [vmem:[%s1670_s0 + $0x40] sm:$0xff]  ;;  %v26_v20 = vld [vmem:[%s1670_s0 + $0x148] sm:$0xff] }
   0x6   :  { %v833_v10 = vrot.slane %v47_v2, %v819_v5  ;;  %v836_v11 = vrot.slane %v47_v2, %v821_v6  ;;  %v25_v19 = vld [vmem:[%s1670_s0 + $0x140] sm:$0xff]  ;;  %v24_v26 = vld [vmem:[%s1670_s0 + $0x108] sm:$0xff] }
   0x7   :  { %v23_v25 = vld [vmem:[%s1670_s0 + $0x100] sm:$0xff]  ;;  %v30_v36 = vld [vmem:[%s1670_s0 + $0x1c8] sm:$0xff] }
   0x8   :  { %v63_v15 = vmul.f32 %v833_v10, %v19_v3  ;;  %v64_v16 = vmul.f32 %v836_v11, %v20_v4  ;;  %v59_v17 = vmul.f32 %v833_v10, %v15_v7  ;;  %v60_v18 = vmul.f32 %v836_v11, %v16_v8  ;;  %v29_v32 = vld [vmem:[%s1670_s0 + $0x1c0] sm:$0xff]  ;;  %v28_v38 = vld [vmem:[%s1670_s0 + $0x188] sm:$0xff] }
   0x9   :  { %v65_v21 = vmul.f32 %v833_v10, %v21_v9  ;;  %v66_v22 = vmul.f32 %v836_v11, %v22_v12  ;;  %v61_v23 = vmul.f32 %v833_v10, %v17_v13  ;;  %v62_v24 = vmul.f32 %v836_v11, %v18_v14  ;;  %v27_v37 = vld [vmem:[%s1670_s0 + $0x180] sm:$0xff]  ;;  %v34_v40 = vld [vmem:[%s1670_s0 + $0x248] sm:$0xff] }
   0xa   :  { %v97_v27 = vadd.f32 %v64_v16, %v63_v15  ;;  %v91_v28 = vadd.f32 %v60_v18, %v59_v17  ;;  %v69_v30 = vmul.f32 %v833_v10, %v25_v19  ;;  %v70_v31 = vmul.f32 %v836_v11, %v26_v20  ;;  %v33_v39 = vld [vmem:[%s1670_s0 + $0x240] sm:$0xff]  ;;  %v32_v42 = vld [vmem:[%s1670_s0 + $0x208] sm:$0xff]  ;;  %v157_v16 = vld [vmem:[%s1670_s0 + $0x50] sm:$0xff] }
   0xb   :  { %v100_v29 = vadd.f32 %v66_v22, %v65_v21  ;;  %v94_v33 = vadd.f32 %v62_v24, %v61_v23  ;;  %v67_v34 = vmul.f32 %v833_v10, %v23_v25  ;;  %v68_v35 = vmul.f32 %v836_v11, %v24_v26  ;;  %v31_v41 = vld [vmem:[%s1670_s0 + $0x200] sm:$0xff]  ;;  %v38_v44 = vld [vmem:[%s1670_s0 + $0x2c8] sm:$0xff]  ;;  %v158_v17 = vld [vmem:[%s1670_s0 + $0x58] sm:$0xff] }
   0xc   :  { %98 = vadd.xlane.f32.xlu1 %v97_v27  ;;  %92 = vadd.xlane.f32.xlu0 %v91_v28  ;;  %v37_v43 = vld [vmem:[%s1670_s0 + $0x2c0] sm:$0xff]  ;;  %v106_v45 = vadd.f32 %v70_v31, %v69_v30  ;;  %v73_v46 = vmul.f32 %v833_v10, %v29_v32  ;;  %v74_v47 = vmul.f32 %v836_v11, %v30_v36  ;;  %v36_v49 = vld [vmem:[%s1670_s0 + $0x288] sm:$0xff]  ;;  %v155_v19 = vld [vmem:[%s1670_s0 + $0x10] sm:$0xff] }
   0xd   :  { %v35_v48 = vld [vmem:[%s1670_s0 + $0x280] sm:$0xff]  ;;  %v103_v51 = vadd.f32 %v68_v35, %v67_v34  ;;  %v71_v52 = vmul.f32 %v833_v10, %v27_v37  ;;  %v72_v53 = vmul.f32 %v836_v11, %v28_v38  ;;  %v42_v54 = vld [vmem:[%s1670_s0 + $0x348] sm:$0xff]  ;;  %v77_v57 = vmul.f32 %v833_v10, %v33_v39  ;;  %v156_v23 = vld [vmem:[%s1670_s0 + $0x18] sm:$0xff] }
   0xe   :  { %v41_v50 = vld [vmem:[%s1670_s0 + $0x340] sm:$0xff]  ;;  %v40_v56 = vld [vmem:[%s1670_s0 + $0x308] sm:$0xff]  ;;  %v78_v58 = vmul.f32 %v836_v11, %v34_v40  ;;  %v75_v59 = vmul.f32 %v833_v10, %v31_v41  ;;  %v76_v60 = vmul.f32 %v836_v11, %v32_v42  ;;  %v81_v62 = vmul.f32 %v833_v10, %v37_v43  ;;  %v161_v24 = vld [vmem:[%s1670_s0 + $0xd0] sm:$0xff] }
   0xf   :  { %v39_v55 = vld [vmem:[%s1670_s0 + $0x300] sm:$0xff]  ;;  %v82_v63 = vmul.f32 %v836_v11, %v38_v44  ;;  %v79_v0 = vmul.f32 %v833_v10, %v35_v48  ;;  %v80_v1 = vmul.f32 %v836_v11, %v36_v49  ;;  %v85_v3 = vmul.f32 %v833_v10, %v41_v50  ;;  %v46_v9 = vld [vmem:[%s1670_s0 + $0x3c8] sm:$0xff]  ;;  %v162_v25 = vld [vmem:[%s1670_s0 + $0xd8] sm:$0xff] }
  0x10   :  { %101 = vadd.xlane.f32.xlu1 %v100_v29  ;;  %95 = vadd.xlane.f32.xlu0 %v94_v33  ;;  %v45_v2 = vld [vmem:[%s1670_s0 + $0x3c0] sm:$0xff]  ;;  %v86_v4 = vmul.f32 %v836_v11, %v42_v54  ;;  %v83_v7 = vmul.f32 %v833_v10, %v39_v55  ;;  %v84_v8 = vmul.f32 %v836_v11, %v40_v56  ;;  %v44_v13 = vld [vmem:[%s1670_s0 + $0x388] sm:$0xff]  ;;  %v159_v30 = vld [vmem:[%s1670_s0 + $0x90] sm:$0xff] }
  0x11   :  { %v43_v12 = vld [vmem:[%s1670_s0 + $0x380] sm:$0xff]  ;;  %v112_v14 = vadd.f32 %v74_v47, %v73_v46  ;;  %v109_v15 = vadd.f32 %v72_v53, %v71_v52  ;;  %v957_v18 = vrot.slane %v187_v61, %v819_v5  ;;  %v118_v20 = vadd.f32 %v78_v58, %v77_v57  ;;  %v160_v31 = vld [vmem:[%s1670_s0 + $0x98] sm:$0xff]  ;;  %v165_v32 = vld [vmem:[%s1670_s0 + $0x150] sm:$0xff] }
  0x12   :  { %v115_v21 = vadd.f32 %v76_v60, %v75_v59  ;;  %v963_v22 = vrot.slane %v187_v61, %v821_v6  ;;  %v974_v26 = vadd.f32 %v82_v63, %v81_v62  ;;  %v976_v27 = vadd.f32 %v80_v1, %v79_v0  ;;  %v166_v37 = vld [vmem:[%s1670_s0 + $0x158] sm:$0xff]  ;;  %v163_v38 = vld [vmem:[%s1670_s0 + $0x110] sm:$0xff] }
  0x13   :  { %v89_v28 = vmul.f32 %v833_v10, %v45_v2  ;;  %v90_v29 = vmul.f32 %v836_v11, %v46_v9  ;;  %v989_v33 = vadd.f32 %v86_v4, %v85_v3  ;;  %v991_v34 = vadd.f32 %v84_v8, %v83_v7  ;;  %v164_v39 = vld [vmem:[%s1670_s0 + $0x118] sm:$0xff]  ;;  %v169_v41 = vld [vmem:[%s1670_s0 + $0x1d0] sm:$0xff] }
  0x14   :  { %107 = vadd.xlane.f32.xlu1 %v106_v45  ;;  %104 = vadd.xlane.f32.xlu0 %v103_v51  ;;  %v87_v35 = vmul.f32 %v833_v10, %v43_v12  ;;  %v88_v36 = vmul.f32 %v836_v11, %v44_v13  ;;  %v201_v40 = vmul.f32 %v957_v18, %v157_v16  ;;  %v170_v42 = vld [vmem:[%s1670_s0 + $0x1d8] sm:$0xff]  ;;  %v167_v43 = vld [vmem:[%s1670_s0 + $0x190] sm:$0xff] }
  0x15   :  { %v199_v10 = vmul.f32 %v957_v18, %v155_v19  ;;  %v205_v11 = vmul.f32 %v957_v18, %v161_v24  ;;  %v202_v44 = vmul.f32 %v963_v22, %v158_v17  ;;  %v200_v45 = vmul.f32 %v963_v22, %v156_v23  ;;  %v168_v48 = vld [vmem:[%s1670_s0 + $0x198] sm:$0xff]  ;;  %v173_v49 = vld [vmem:[%s1670_s0 + $0x250] sm:$0xff]  ;;  %v327_v17 = vld [vmem:[%s1669_s1 + $0x4] sm:$0x3] }
  0x16   :  { %v206_v46 = vmul.f32 %v963_v22, %v162_v25  ;;  %v203_v47 = vmul.f32 %v957_v18, %v159_v30  ;;  %v174_v50 = vld [vmem:[%s1670_s0 + $0x258] sm:$0xff]  ;;  %v204_v51 = vmul.f32 %v963_v22, %v160_v31  ;;  %v209_v52 = vmul.f32 %v957_v18, %v165_v32  ;;  %v171_v55 = vld [vmem:[%s1670_s0 + $0x210] sm:$0xff]  ;;  %v298_v32 = vld [vmem:[%s1670_s0 + $0x68] sm:$0xff] }
  0x17   :  { %v210_v53 = vmul.f32 %v963_v22, %v166_v37  ;;  %v207_v54 = vmul.f32 %v957_v18, %v163_v38  ;;  %v172_v56 = vld [vmem:[%s1670_s0 + $0x218] sm:$0xff]  ;;  %v208_v57 = vmul.f32 %v963_v22, %v164_v39  ;;  %v213_v58 = vmul.f32 %v957_v18, %v169_v41  ;;  %v177_v0 = vld [vmem:[%s1670_s0 + $0x2d0] sm:$0xff]  ;;  %v296_v39 = vld [vmem:[%s1670_s0 + $0x28] sm:$0xff] }
  0x18   :  { %113 = vadd.xlane.f32.xlu1 %v112_v14  ;;  %110 = vadd.xlane.f32.xlu0 %v109_v15  ;;  %v214_v59 = vmul.f32 %v963_v22, %v170_v42  ;;  %v211_v60 = vmul.f32 %v957_v18, %v167_v43  ;;  %v212_v61 = vmul.f32 %v963_v22, %v168_v48  ;;  %v178_v1 = vld [vmem:[%s1670_s0 + $0x2d8] sm:$0xff]  ;;  %v175_v8 = vld [vmem:[%s1670_s0 + $0x290] sm:$0xff] }
  0x19   :  { %v217_v62 = vmul.f32 %v957_v18, %v173_v49  ;;  %v218_v63 = vmul.f32 %v963_v22, %v174_v50  ;;  %v1052_v2 = vadd.f32 %v90_v29, %v89_v28  ;;  %v1054_v3 = vadd.f32 %v88_v36, %v87_v35  ;;  %v176_v15 = vld [vmem:[%s1670_s0 + $0x298] sm:$0xff]  ;;  %v181_v16 = vld [vmem:[%s1670_s0 + $0x350] sm:$0xff]  ;;  %v297_v28 = vld [vmem:[%s1670_s0 + $0x60] sm:$0xff] }
  0x1a   :  { %v215_v4 = vmul.f32 %v957_v18, %v171_v55  ;;  %v216_v7 = vmul.f32 %v963_v22, %v172_v56  ;;  %v1061_v9 = vadd.f32 %v202_v44, %v201_v40  ;;  %v1063_v12 = vadd.f32 %v200_v45, %v199_v10  ;;  %v182_v24 = vld [vmem:[%s1670_s0 + $0x358] sm:$0xff]  ;;  %v179_v25 = vld [vmem:[%s1670_s0 + $0x310] sm:$0xff]  ;;  %v295_v35 = vld [vmem:[%s1670_s0 + $0x20] sm:$0xff] }
  0x1b   :  { %v1065_v13 = vadd.f32 %v206_v46, %v205_v11  ;;  %v1067_v14 = vadd.f32 %v204_v51, %v203_v47  ;;  %v1078_v19 = vadd.f32 %v210_v53, %v209_v52  ;;  %v222_v23 = vmul.f32 %v963_v22, %v178_v1  ;;  %v302_v40 = vld [vmem:[%s1670_s0 + $0xe8] sm:$0xff]  ;;  %v299_v10 = vld [vmem:[%s1670_s0 + $0xa0] sm:$0xff] }
  0x1c   :  { %119 = vadd.xlane.f32.xlu1 %v118_v20  ;;  %116 = vadd.xlane.f32.xlu0 %v115_v21  ;;  %v1080_v20 = vadd.f32 %v208_v57, %v207_v54  ;;  %v221_v21 = vmul.f32 %v957_v18, %v177_v0  ;;  %v1095_v29 = vadd.f32 %v214_v59, %v213_v58  ;;  %v300_v44 = vld [vmem:[%s1670_s0 + $0xa8] sm:$0xff]  ;;  %v305_v45 = vld [vmem:[%s1670_s0 + $0x160] sm:$0xff] }
  0x1d   :  { %v1097_v30 = vadd.f32 %v212_v61, %v211_v60  ;;  %v1099_v31 = vadd.f32 %v218_v63, %v217_v62  ;;  %v1110_v36 = vadd.f32 %v216_v7, %v215_v4  ;;  %v1116_v37 = vmul.f32 %v963_v22, %v176_v15  ;;  %v306_v46 = vld [vmem:[%s1670_s0 + $0x168] sm:$0xff]  ;;  %v303_v51 = vld [vmem:[%s1670_s0 + $0x120] sm:$0xff] }
  0x1e   :  { %v1119_v38 = vrot.slane %v327_v17, %v819_v5  ;;  %v1131_v11 = vmul.f32 %v957_v18, %v181_v16  ;;  %v1134_v41 = vmul.f32 %v963_v22, %v182_v24  ;;  %v1137_v42 = vmul.f32 %v957_v18, %v179_v25  ;;  %v304_v55 = vld [vmem:[%s1670_s0 + $0x128] sm:$0xff]  ;;  %v309_v56 = vld [vmem:[%s1670_s0 + $0x1e0] sm:$0xff] }
  0x1f   :  { %v1140_v43 = vrot.slane %v327_v17, %v821_v6  ;;  %v1151_v47 = vadd.f32 %v222_v23, %v221_v21  ;;  %v310_v59 = vld [vmem:[%s1670_s0 + $0x1e8] sm:$0xff]  ;;  %v307_v60 = vld [vmem:[%s1670_s0 + $0x1a0] sm:$0xff] }
  0x20   :  { %125 = vadd.xlane.f32.xlu1 %v974_v26  ;;  %122 = vadd.xlane.f32.xlu0 %v976_v27  ;;  %v301_v26 = vld [vmem:[%s1670_s0 + $0xe0] sm:$0xff]  ;;  %v1113_v27 = vmul.f32 %v957_v18, %v175_v8  ;;  %v341_v48 = vmul.f32 %v1119_v38, %v297_v28  ;;  %v339_v49 = vmul.f32 %v1119_v38, %v295_v35  ;;  %v308_v61 = vld [vmem:[%s1670_s0 + $0x1a8] sm:$0xff] }
  0x21   :  { %v345_v50 = vmul.f32 %v1119_v38, %v301_v26  ;;  %v342_v52 = vmul.f32 %v1140_v43, %v298_v32  ;;  %v340_v53 = vmul.f32 %v1140_v43, %v296_v39  ;;  %v346_v54 = vmul.f32 %v1140_v43, %v302_v40  ;;  %v313_v4 = vld [vmem:[%s1670_s0 + $0x260] sm:$0xff]  ;;  %v314_v7 = vld [vmem:[%s1670_s0 + $0x268] sm:$0xff] }
  0x22   :  { %v343_v57 = vmul.f32 %v1119_v38, %v299_v10  ;;  %v350_v58 = vmul.f32 %v1140_v43, %v306_v46  ;;  %v347_v1 = vmul.f32 %v1119_v38, %v303_v51  ;;  %v311_v8 = vld [vmem:[%s1670_s0 + $0x220] sm:$0xff]  ;;  %v348_v17 = vmul.f32 %v1140_v43, %v304_v55  ;;  %v312_v23 = vld [vmem:[%s1670_s0 + $0x228] sm:$0xff] }
  0x23   :  { %v1183_v62 = vadd.f32 %v342_v52, %v341_v48  ;;  %v1185_v63 = vadd.f32 %v340_v53, %v339_v49  ;;  %v1187_v0 = vadd.f32 %v346_v54, %v345_v50  ;;  %v353_v21 = vmul.f32 %v1119_v38, %v309_v56  ;;  %v317_v24 = vld [vmem:[%s1670_s0 + $0x2e0] sm:$0xff]  ;;  %v318_v35 = vld [vmem:[%s1670_s0 + $0x2e8] sm:$0xff] }
  0x24   :  { %131 = vadd.xlane.f32.xlu1 %v989_v33  ;;  %128 = vadd.xlane.f32.xlu0 %v991_v34  ;;  %v344_v33 = vmul.f32 %v1140_v43, %v300_v44  ;;  %v349_v34 = vmul.f32 %v1119_v38, %v305_v45  ;;  %v354_v25 = vmul.f32 %v1140_v43, %v310_v59  ;;  %v315_v26 = vld [vmem:[%s1670_s0 + $0x2a0] sm:$0xff]  ;;  %v322_v45 = vld [vmem:[%s1670_s0 + $0x368] sm:$0xff] }
  0x25   :  { %v351_v28 = vmul.f32 %v1119_v38, %v307_v60  ;;  %v352_v32 = vmul.f32 %v1140_v43, %v308_v61  ;;  %v1225_v39 = vadd.f32 %v348_v17, %v347_v1  ;;  %v358_v40 = vmul.f32 %v1140_v43, %v314_v7  ;;  %v321_v44 = vld [vmem:[%s1670_s0 + $0x360] sm:$0xff]  ;;  %v320_v52 = vld [vmem:[%s1670_s0 + $0x328] sm:$0xff]  ;;  %v437_v17 = vld [vmem:[%s1670_s0 + $0x70] sm:$0xff] }
  0x26   :  { %v1199_v15 = vadd.f32 %v344_v33, %v343_v57  ;;  %v1201_v16 = vadd.f32 %v350_v58, %v349_v34  ;;  %v355_v10 = vmul.f32 %v1119_v38, %v311_v8  ;;  %v1236_v46 = vadd.f32 %v354_v25, %v353_v21  ;;  %v319_v51 = vld [vmem:[%s1670_s0 + $0x320] sm:$0xff]  ;;  %v326_v33 = vld [vmem:[%s1670_s0 + $0x3e8] sm:$0xff] }
  0x27   :  { %v1238_v48 = vadd.f32 %v352_v32, %v351_v28  ;;  %v356_v49 = vmul.f32 %v1140_v43, %v312_v23  ;;  %v361_v50 = vmul.f32 %v1119_v38, %v317_v24  ;;  %v362_v54 = vmul.f32 %v1140_v43, %v318_v35  ;;  %v325_v57 = vld [vmem:[%s1670_s0 + $0x3e0] sm:$0xff]  ;;  %v324_v61 = vld [vmem:[%s1670_s0 + $0x3a8] sm:$0xff]  ;;  %v438_v28 = vld [vmem:[%s1670_s0 + $0x78] sm:$0xff] }
  0x28   :  { %137 = vadd.xlane.f32.xlu1 %v1052_v2  ;;  %134 = vadd.xlane.f32.xlu0 %v1054_v3  ;;  %v316_v2 = vld [vmem:[%s1670_s0 + $0x2a8] sm:$0xff]  ;;  %v357_v3 = vmul.f32 %v1119_v38, %v313_v4  ;;  %v359_v55 = vmul.f32 %v1119_v38, %v315_v26  ;;  %v323_v34 = vld [vmem:[%s1670_s0 + $0x3a0] sm:$0xff]  ;;  %v365_v59 = vmul.f32 %v1119_v38, %v321_v44  ;;  %v435_v32 = vld [vmem:[%s1670_s0 + $0x30] sm:$0xff] }
  0x29   :  { %v360_v56 = vmul.f32 %v1140_v43, %v316_v2  ;;  %v1264_v58 = vadd.f32 %v356_v49, %v355_v10  ;;  %v366_v60 = vmul.f32 %v1140_v43, %v322_v45  ;;  %v467_v1 = vld [vmem:[%s1669_s1 + $0x6] sm:$0x3]  ;;  %v1277_v4 = vadd.f32 %v362_v54, %v361_v50  ;;  %v436_v35 = vld [vmem:[%s1670_s0 + $0x38] sm:$0xff]  ;;  %v439_v44 = vld [vmem:[%s1670_s0 + $0xb0] sm:$0xff] }
  0x2a   :  { %v1248_v53 = vadd.f32 %v358_v40, %v357_v3  ;;  %v363_v7 = vmul.f32 %v1119_v38, %v319_v51  ;;  %v364_v8 = vmul.f32 %v1140_v43, %v320_v52  ;;  %v369_v23 = vmul.f32 %v1119_v38, %v325_v57  ;;  %v441_v40 = vld [vmem:[%s1670_s0 + $0xf0] sm:$0xff]  ;;  %v442_v10 = vld [vmem:[%s1670_s0 + $0xf8] sm:$0xff] }
  0x2b   :  { %v1286_v21 = vadd.f32 %v366_v60, %v365_v59  ;;  %v370_v24 = vmul.f32 %v1140_v43, %v326_v33  ;;  %v367_v25 = vmul.f32 %v1119_v38, %v323_v34  ;;  %v368_v2 = vmul.f32 %v1140_v43, %v324_v61  ;;  %v440_v45 = vld [vmem:[%s1670_s0 + $0xb8] sm:$0xff]  ;;  %v445_v49 = vld [vmem:[%s1670_s0 + $0x170] sm:$0xff] }
  0x2c   :  { %235 = vadd.xlane.f32.xlu1 %v1061_v9  ;;  %232 = vadd.xlane.f32.xlu0 %v1063_v12  ;;  %v180_v9 = vld [vmem:[%s1670_s0 + $0x318] sm:$0xff]  ;;  %v1279_v12 = vadd.f32 %v360_v56, %v359_v55  ;;  %v1300_v26 = vadd.f32 %v364_v8, %v363_v7  ;;  %v1304_v3 = vrot.slane %v467_v1, %v819_v5  ;;  %v443_v51 = vld [vmem:[%s1670_s0 + $0x130] sm:$0xff] }
  0x2d   :  { %v1307_v38 = vrot.slane %v467_v1, %v821_v6  ;;  %v1322_v5 = vadd.f32 %v1116_v37, %v1113_v27  ;;  %v1325_v6 = vmul.f32 %v963_v22, %v180_v9  ;;  %v1327_v43 = vadd.f32 %v370_v24, %v369_v23  ;;  %v444_v57 = vld [vmem:[%s1670_s0 + $0x138] sm:$0xff]  ;;  %v449_v33 = vld [vmem:[%s1670_s0 + $0x1f0] sm:$0xff] }
  0x2e   :  { %v481_v27 = vmul.f32 %v1304_v3, %v437_v17  ;;  %v479_v50 = vmul.f32 %v1304_v3, %v435_v32  ;;  %v485_v54 = vmul.f32 %v1304_v3, %v441_v40  ;;  %v483_v56 = vmul.f32 %v1304_v3, %v439_v44  ;;  %v450_v34 = vld [vmem:[%s1670_s0 + $0x1f8] sm:$0xff]  ;;  %v447_v9 = vld [vmem:[%s1670_s0 + $0x1b0] sm:$0xff] }
  0x2f   :  { %v482_v37 = vmul.f32 %v1307_v38, %v438_v28  ;;  %v480_v52 = vmul.f32 %v1307_v38, %v436_v35  ;;  %v486_v55 = vmul.f32 %v1307_v38, %v442_v10  ;;  %v484_v60 = vmul.f32 %v1307_v38, %v440_v45  ;;  %v448_v7 = vld [vmem:[%s1670_s0 + $0x1b8] sm:$0xff]  ;;  %v453_v8 = vld [vmem:[%s1670_s0 + $0x270] sm:$0xff] }
  0x30   :  { %241 = vadd.xlane.f32.xlu1 %v1065_v13  ;;  %238 = vadd.xlane.f32.xlu0 %v1067_v14  ;;  %v446_v13 = vld [vmem:[%s1670_s0 + $0x178] sm:$0xff]  ;;  %v1338_v14 = vadd.f32 %v368_v2, %v367_v25  ;;  %v489_v61 = vmul.f32 %v1304_v3, %v445_v49  ;;  %v487_v24 = vmul.f32 %v1304_v3, %v443_v51  ;;  %v451_v28 = vld [vmem:[%s1670_s0 + $0x230] sm:$0xff] }
  0x31   :  { %v1359_v59 = vadd.f32 %v482_v37, %v481_v27  ;;  %v490_v1 = vmul.f32 %v1307_v38, %v446_v13  ;;  %v1375_v17 = vadd.f32 %v480_v52, %v479_v50  ;;  %v1377_v23 = vadd.f32 %v486_v55, %v485_v54  ;;  %v454_v25 = vld [vmem:[%s1670_s0 + $0x278] sm:$0xff]  ;;  %v457_v40 = vld [vmem:[%s1670_s0 + $0x2f0] sm:$0xff] }
  0x32   :  { %v1389_v32 = vadd.f32 %v484_v60, %v483_v56  ;;  %v488_v35 = vmul.f32 %v1307_v38, %v444_v57  ;;  %v493_v2 = vmul.f32 %v1304_v3, %v449_v33  ;;  %v494_v10 = vmul.f32 %v1307_v38, %v450_v34  ;;  %v458_v13 = vld [vmem:[%s1670_s0 + $0x2f8] sm:$0xff]  ;;  %v455_v27 = vld [vmem:[%s1670_s0 + $0x2b0] sm:$0xff] }
  0x33   :  { %v491_v44 = vmul.f32 %v1304_v3, %v447_v9  ;;  %v492_v45 = vmul.f32 %v1307_v38, %v448_v7  ;;  %v497_v49 = vmul.f32 %v1304_v3, %v453_v8  ;;  %v456_v37 = vld [vmem:[%s1670_s0 + $0x2b8] sm:$0xff]  ;;  %v498_v51 = vmul.f32 %v1307_v38, %v454_v25  ;;  %v461_v55 = vld [vmem:[%s1670_s0 + $0x370] sm:$0xff] }
  0x34   :  { %247 = vadd.xlane.f32.xlu1 %v1078_v19  ;;  %244 = vadd.xlane.f32.xlu0 %v1080_v20  ;;  %v452_v19 = vld [vmem:[%s1670_s0 + $0x238] sm:$0xff]  ;;  %v1391_v20 = vadd.f32 %v490_v1, %v489_v61  ;;  %v1411_v50 = vadd.f32 %v488_v35, %v487_v24  ;;  %v495_v52 = vmul.f32 %v1304_v3, %v451_v28  ;;  %v459_v57 = vld [vmem:[%s1670_s0 + $0x330] sm:$0xff] }
  0x35   :  { %v496_v54 = vmul.f32 %v1307_v38, %v452_v19  ;;  %v462_v56 = vld [vmem:[%s1670_s0 + $0x378] sm:$0xff]  ;;  %v1427_v33 = vadd.f32 %v494_v10, %v493_v2  ;;  %v1429_v34 = vadd.f32 %v492_v45, %v491_v44  ;;  %v501_v60 = vmul.f32 %v1304_v3, %v457_v40  ;;  %v465_v1 = vld [vmem:[%s1670_s0 + $0x3f0] sm:$0xff] }
  0x36   :  { %v460_v61 = vld [vmem:[%s1670_s0 + $0x338] sm:$0xff]  ;;  %v1441_v9 = vadd.f32 %v498_v51, %v497_v49  ;;  %v502_v7 = vmul.f32 %v1307_v38, %v458_v13  ;;  %v499_v8 = vmul.f32 %v1304_v3, %v455_v27  ;;  %v463_v24 = vld [vmem:[%s1670_s0 + $0x3b0] sm:$0xff]  ;;  %v500_v25 = vmul.f32 %v1307_v38, %v456_v37 }
  0x37   :  { %v505_v28 = vmul.f32 %v1304_v3, %v461_v55  ;;  %v506_v19 = vmul.f32 %v1307_v38, %v462_v56  ;;  %v503_v35 = vmul.f32 %v1304_v3, %v459_v57  ;;  %v464_v2 = vld [vmem:[%s1670_s0 + $0x3b8] sm:$0xff]  ;;  %v504_v10 = vmul.f32 %v1307_v38, %v460_v61  ;;  %v185_v49 = vld [vmem:[%s1670_s0 + $0x3d0] sm:$0xff] }
  0x38   :  { %253 = vadd.xlane.f32.xlu1 %v1095_v29  ;;  %250 = vadd.xlane.f32.xlu0 %v1097_v30  ;;  %v466_v29 = vld [vmem:[%s1670_s0 + $0x3f8] sm:$0xff]  ;;  %v1443_v30 = vadd.f32 %v496_v54, %v495_v52  ;;  %v544_v40 = vadd.f32 %v502_v7, %v501_v60  ;;  %v509_v44 = vmul.f32 %v1304_v3, %v465_v1  ;;  %v183_v52 = vld [vmem:[%s1670_s0 + $0x390] sm:$0xff] }
  0x39   :  { %v510_v45 = vmul.f32 %v1307_v38, %v466_v29  ;;  %v186_v13 = vld [vmem:[%s1670_s0 + $0x3d8] sm:$0xff]  ;;  %v541_v27 = vadd.f32 %v500_v25, %v499_v8  ;;  %v550_v37 = vadd.f32 %v506_v19, %v505_v28  ;;  %v507_v51 = vmul.f32 %v1304_v3, %v463_v24 }
  0x3a   :  { %v508_v55 = vmul.f32 %v1307_v38, %v464_v2  ;;  %v270_v56 = vadd.f32 %v1134_v41, %v1131_v11  ;;  %v229_v57 = vmul.f32 %v957_v18, %v185_v49  ;;  %v230_v60 = vmul.f32 %v963_v22, %v186_v13 }
  0x3b   :  { %v556_v54 = vadd.f32 %v510_v45, %v509_v44  ;;  %v267_v61 = vadd.f32 %v1325_v6, %v1137_v42  ;;  %v227_v1 = vmul.f32 %v957_v18, %v183_v52 }
  0x3c   :  { %259 = vadd.xlane.f32.xlu1 %v1099_v31  ;;  %256 = vadd.xlane.f32.xlu0 %v1110_v36  ;;  %v184_v31 = vld [vmem:[%s1670_s0 + $0x398] sm:$0xff]  ;;  %v547_v36 = vadd.f32 %v504_v10, %v503_v35  ;;  %v553_v3 = vadd.f32 %v508_v55, %v507_v51  ;;  %v276_v38 = vadd.f32 %v230_v60, %v229_v57 }
  0x3d   :  { %v228_v29 = vmul.f32 %v963_v22, %v184_v31 }
  0x3f   :  { %v273_v11 = vadd.f32 %v228_v29, %v227_v1 }
  0x40   :  { %265 = vadd.xlane.f32.xlu1 %v1151_v47  ;;  %262 = vadd.xlane.f32.xlu0 %v1322_v5 }
  0x44   :  { %271 = vadd.xlane.f32.xlu1 %v270_v56  ;;  %268 = vadd.xlane.f32.xlu0 %v267_v61 }
  0x48   :  { %277 = vadd.xlane.f32.xlu1 %v276_v38  ;;  %274 = vadd.xlane.f32.xlu0 %v273_v11 }
  0x4c   :  { %375 = vadd.xlane.f32.xlu1 %v1183_v62  ;;  %372 = vadd.xlane.f32.xlu0 %v1185_v63 }
  0x50   :  { %381 = vadd.xlane.f32.xlu1 %v1187_v0  ;;  %378 = vadd.xlane.f32.xlu0 %v1199_v15 }
  0x54   :  { %387 = vadd.xlane.f32.xlu1 %v1201_v16  ;;  %384 = vadd.xlane.f32.xlu0 %v1225_v39 }
  0x58   :  { %393 = vadd.xlane.f32.xlu1 %v1236_v46  ;;  %390 = vadd.xlane.f32.xlu0 %v1238_v48 }
  0x5c   :  { %399 = vadd.xlane.f32.xlu1 %v1248_v53  ;;  %396 = vadd.xlane.f32.xlu0 %v1264_v58 }
  0x60   :  { %405 = vadd.xlane.f32.xlu1 %v1277_v4  ;;  %402 = vadd.xlane.f32.xlu0 %v1279_v12 }
  0x64   :  { %411 = vadd.xlane.f32.xlu1 %v1286_v21  ;;  %408 = vadd.xlane.f32.xlu0 %v1300_v26 }
  0x68   :  { %417 = vadd.xlane.f32.xlu1 %v1327_v43  ;;  %414 = vadd.xlane.f32.xlu0 %v1338_v14 }
  0x6c   :  { %515 = vadd.xlane.f32.xlu1 %v1359_v59  ;;  %512 = vadd.xlane.f32.xlu0 %v1375_v17 }
  0x70   :  { %521 = vadd.xlane.f32.xlu1 %v1377_v23  ;;  %518 = vadd.xlane.f32.xlu0 %v1389_v32 }
  0x74   :  { %527 = vadd.xlane.f32.xlu1 %v1391_v20  ;;  %524 = vadd.xlane.f32.xlu0 %v1411_v50 }
  0x78   :  { %533 = vadd.xlane.f32.xlu1 %v1427_v33  ;;  %530 = vadd.xlane.f32.xlu0 %v1429_v34 }
  0x7c   :  { %539 = vadd.xlane.f32.xlu1 %v1441_v9  ;;  %536 = vadd.xlane.f32.xlu0 %v1443_v30 }
  0x80   :  { %545 = vadd.xlane.f32.xlu1 %v544_v40  ;;  %542 = vadd.xlane.f32.xlu0 %v541_v27 }
  0x84   :  { %551 = vadd.xlane.f32.xlu1 %v550_v37  ;;  %548 = vadd.xlane.f32.xlu0 %v547_v36  ;;  %v1563_v36 = vstv %s1671_s2 }
  0x88   :  { %557 = vadd.xlane.f32.xlu1 %v556_v54  ;;  %554 = vadd.xlane.f32.xlu0 %v553_v3 }
  0x99   :  { %v99_v18 = vpop.xlane.xlu1 %98  ;;  %v93_v22 = vpop.xlane.xlu0 %92 }
  0x9d   :  { %v102_v41 = vpop.xlane.xlu1 %101  ;;  %v96_v42 = vpop.xlane.xlu0 %95 }
  0xa1   :  { %v108_v47 = vpop.xlane.xlu1 %107  ;;  %v105_v62 = vpop.xlane.xlu0 %104 }
  0xa5   :  { %v1512_v63 = vpop.xlane.xlu1 %113  ;;  %v1514_v0 = vpop.xlane.xlu0 %110 }
  0xa9   :  { %v1516_v15 = vpop.xlane.xlu1 %119  ;;  %v1518_v16 = vpop.xlane.xlu0 %116 }
  0xad   :  { %v1520_v39 = vpop.xlane.xlu1 %125  ;;  %v1522_v46 = vpop.xlane.xlu0 %122 }
  0xb1   :  { %v1524_v48 = vpop.xlane.xlu1 %131  ;;  %v1526_v53 = vpop.xlane.xlu0 %128 }
  0xb5   :  { %v1528_v58 = vpop.xlane.xlu1 %137  ;;  %v1530_v4 = vpop.xlane.xlu0 %134 }
  0xb9   :  { %v236_v12 = vpop.xlane.xlu1 %235  ;;  %v233_v21 = vpop.xlane.xlu0 %232 }
  0xba   :  { %v280_v37 = vadd.f32 %v236_v12, %v96_v42  ;;  %v279_v51 = vadd.f32 %v233_v21, %v93_v22 }
  0xbd   :  { %v242_v26 = vpop.xlane.xlu1 %241  ;;  %v239_v5 = vpop.xlane.xlu0 %238 }
  0xbe   :  { %v282_v56 = vadd.f32 %v242_v26, %v102_v41  ;;  %v281_v57 = vadd.f32 %v239_v5, %v99_v18 }
  0xc1   :  { %v248_v6 = vpop.xlane.xlu1 %247  ;;  %v245_v43 = vpop.xlane.xlu0 %244 }
  0xc2   :  { %v284_v11 = vadd.f32 %v248_v6, %v108_v47  ;;  %v283_v22 = vadd.f32 %v245_v43, %v105_v62 }
  0xc5   :  { %v254_v14 = vpop.xlane.xlu1 %253  ;;  %v251_v59 = vpop.xlane.xlu0 %250 }
  0xc6   :  { %v286_v26 = vadd.f32 %v254_v14, %v1512_v63  ;;  %v285_v5 = vadd.f32 %v251_v59, %v1514_v0 }
  0xc9   :  { %v1532_v17 = vpop.xlane.xlu1 %259  ;;  %v1534_v23 = vpop.xlane.xlu0 %256 }
  0xca   :  { %v287_v63 = vadd.f32 %v1534_v23, %v1518_v16 }
  0xcd   :  { %v1536_v32 = vpop.xlane.xlu1 %265  ;;  %v1538_v20 = vpop.xlane.xlu0 %262 }
  0xd1   :  { %v1540_v50 = vpop.xlane.xlu1 %271  ;;  %v1542_v33 = vpop.xlane.xlu0 %268 }
  0xd5   :  { %v1544_v34 = vpop.xlane.xlu1 %277  ;;  %v1546_v9 = vpop.xlane.xlu0 %274 }
  0xd9   :  { %v376_v30 = vpop.xlane.xlu1 %375  ;;  %v373_v7 = vpop.xlane.xlu0 %372 }
  0xda   :  { %v420_v52 = vadd.f32 %v376_v30, %v280_v37  ;;  %v419_v31 = vadd.f32 %v373_v7, %v279_v51 }
  0xdd   :  { %v382_v8 = vpop.xlane.xlu1 %381  ;;  %v379_v24 = vpop.xlane.xlu0 %378 }
  0xde   :  { %v422_v61 = vadd.f32 %v382_v8, %v282_v56  ;;  %v421_v1 = vadd.f32 %v379_v24, %v281_v57 }
  0xe1   :  { %v388_v25 = vpop.xlane.xlu1 %387  ;;  %v385_v28 = vpop.xlane.xlu0 %384 }
  0xe2   :  { %v424_v51 = vadd.f32 %v388_v25, %v284_v11 }
  0xe5   :  { %v394_v19 = vpop.xlane.xlu1 %393  ;;  %v391_v35 = vpop.xlane.xlu0 %390 }
  0xe9   :  { %v400_v2 = vpop.xlane.xlu1 %399  ;;  %v397_v40 = vpop.xlane.xlu0 %396 }
  0xed   :  { %v1548_v10 = vpop.xlane.xlu1 %405  ;;  %v1550_v44 = vpop.xlane.xlu0 %402 }
  0xf1   :  { %v1552_v45 = vpop.xlane.xlu1 %411  ;;  %v1554_v49 = vpop.xlane.xlu0 %408 }
  0xf5   :  { %v1556_v13 = vpop.xlane.xlu1 %417  ;;  %v1558_v27 = vpop.xlane.xlu0 %414 }
  0xf6   :  { %1673 = vst [vmem:[#allocation3_spill] sm:$0xff] %v1558_v27  ;;  %v423_v27 = vadd.f32 %v385_v28, %v283_v22 }
  0xf9   :  { %v516_v54 = vpop.xlane.xlu1 %515  ;;  %v513_v55 = vpop.xlane.xlu0 %512 }
  0xfa   :  { %v560_v60 = vadd.f32 %v516_v54, %v420_v52  ;;  %v559_v3 = vadd.f32 %v513_v55, %v419_v31  ;;  %v426_v52 = vadd.f32 %v394_v19, %v286_v26  ;;  %v425_v31 = vadd.f32 %v391_v35, %v285_v5 }
  0xfb   :  { %v288_v54 = vadd.f32 %v1532_v17, %v1516_v15  ;;  %v427_v35 = vadd.f32 %v397_v40, %v287_v63  ;;  %v290_v15 = vadd.f32 %v1536_v32, %v1520_v39  ;;  %v292_v40 = vadd.f32 %v1540_v50, %v1524_v48 }
  0xfc   :  { %v578_v29 = vadd.f32 %v1563_v36, %v560_v60  ;;  %v577_v38 = vadd.f32 %v1563_v36, %v559_v3  ;;  %v289_v3 = vadd.f32 %v1538_v20, %v1522_v46  ;;  %v291_v46 = vadd.f32 %v1542_v33, %v1526_v53 }
  0xfd   :  { %v522_v42 = vpop.xlane.xlu1 %521  ;;  %v519_v12 = vpop.xlane.xlu0 %518  ;;  %v428_v19 = vadd.f32 %v400_v2, %v288_v54  ;;  %v432_v48 = vadd.f32 %v1552_v45, %v292_v40  ;;  %v294_v33 = vadd.f32 %v1544_v34, %v1528_v58 }
  0xfe   :  { %v711_v21 = vmul.f32 -1.442695, %v578_v29  ;;  %v710_v30 = vmul.f32 -1.442695, %v577_v38  ;;  %v562_v7 = vadd.f32 %v522_v42, %v422_v61  ;;  %v561_v37 = vadd.f32 %v519_v12, %v421_v1 }
  0xff   :  { %v430_v38 = vadd.f32 %v1548_v10, %v290_v15  ;;  %v429_v20 = vadd.f32 %v1550_v44, %v289_v3  ;;  %v293_v44 = vadd.f32 %v1546_v9, %v1530_v4  ;;  %v1674_v9 = vld [vmem:[#allocation3_spill] sm:$0xff] }
 0x100   :  { %726 = vpow2.f32 %v711_v21  ;;  %v580_v18 = vadd.f32 %v1563_v36, %v562_v7  ;;  %v579_v41 = vadd.f32 %v1563_v36, %v561_v37 }
 0x101   :  { %728 = vpow2.f32 %v710_v30  ;;  %v528_v47 = vpop.xlane.xlu1 %527  ;;  %v525_v62 = vpop.xlane.xlu0 %524 }
 0x102   :  { %v713_v6 = vmul.f32 -1.442695, %v580_v18  ;;  %v712_v43 = vmul.f32 -1.442695, %v579_v41  ;;  %v564_v8 = vadd.f32 %v528_v47, %v424_v51  ;;  %v563_v24 = vadd.f32 %v525_v62, %v423_v27 }
 0x103   :  { %v431_v41 = vadd.f32 %v1554_v49, %v291_v46 }
 0x104   :  { %730 = vpow2.f32 %v713_v6  ;;  %v582_v25 = vadd.f32 %v1563_v36, %v564_v8  ;;  %v581_v28 = vadd.f32 %v1563_v36, %v563_v24  ;;  %v434_v24 = vadd.f32 %v1556_v13, %v294_v33 }
 0x105   :  { %732 = vpow2.f32 %v712_v43  ;;  %v534_v0 = vpop.xlane.xlu1 %533  ;;  %v531_v14 = vpop.xlane.xlu0 %530 }
 0x106   :  { %v715_v59 = vmul.f32 -1.442695, %v582_v25  ;;  %v714_v55 = vmul.f32 -1.442695, %v581_v28  ;;  %v566_v56 = vadd.f32 %v534_v0, %v426_v52  ;;  %v565_v27 = vadd.f32 %v531_v14, %v425_v31 }
 0x107   :  { %v433_v25 = vadd.f32 %v1674_v9, %v293_v44 }
 0x108   :  { %734 = vpow2.f32 %v715_v59  ;;  %v584_v57 = vadd.f32 %v1563_v36, %v566_v56  ;;  %v583_v60 = vadd.f32 %v1563_v36, %v565_v27 }
 0x109   :  { %736 = vpow2.f32 %v714_v55  ;;  %v540_v17 = vpop.xlane.xlu1 %539  ;;  %v537_v16 = vpop.xlane.xlu0 %536 }
 0x10a   :  { %v727_v23 = vpop.eup %726  ;;  %v717_v61 = vmul.f32 -1.442695, %v584_v57  ;;  %v568_v1 = vadd.f32 %v540_v17, %v428_v19  ;;  %v567_v29 = vadd.f32 %v537_v16, %v427_v35  ;;  %v716_v22 = vmul.f32 -1.442695, %v583_v60 }
 0x10b   :  { %v729_v2 = vpop.eup %728  ;;  %v642_v11 = vadd.f32 1.0, %v727_v23 }
 0x10c   :  { %v641_v42 = vadd.f32 1.0, %v729_v2  ;;  %738 = vpow2.f32 %v717_v61  ;;  %v586_v39 = vadd.f32 %v1563_v36, %v568_v1  ;;  %v585_v32 = vadd.f32 %v1563_v36, %v567_v29 }
 0x10d   :  { %740 = vrcp.f32 %v642_v11  ;;  %v546_v12 = vpop.xlane.xlu1 %545  ;;  %v543_v21 = vpop.xlane.xlu0 %542 }
 0x10e   :  { %v731_v30 = vpop.eup %730  ;;  %742 = vrcp.f32 %v641_v42  ;;  %v719_v50 = vmul.f32 -1.442695, %v586_v39  ;;  %v570_v10 = vadd.f32 %v546_v12, %v430_v38  ;;  %v718_v51 = vmul.f32 -1.442695, %v585_v32 }
 0x10f   :  { %v733_v7 = vpop.eup %732  ;;  %v644_v37 = vadd.f32 1.0, %v731_v30  ;;  %744 = vpow2.f32 %v716_v22  ;;  %v569_v18 = vadd.f32 %v543_v21, %v429_v20 }
 0x110   :  { %v643_v26 = vadd.f32 1.0, %v733_v7  ;;  %746 = vpow2.f32 %v719_v50  ;;  %v588_v53 = vadd.f32 %v1563_v36, %v570_v10 }
 0x111   :  { %748 = vrcp.f32 %v644_v37  ;;  %v587_v45 = vadd.f32 %v1563_v36, %v569_v18  ;;  %v552_v5 = vpop.xlane.xlu1 %551  ;;  %v549_v47 = vpop.xlane.xlu0 %548 }
 0x112   :  { %v735_v62 = vpop.eup %734  ;;  %750 = vrcp.f32 %v643_v26  ;;  %v721_v6 = vmul.f32 -1.442695, %v588_v53  ;;  %v572_v43 = vadd.f32 %v552_v5, %v432_v48  ;;  %v571_v49 = vadd.f32 %v549_v47, %v431_v41 }
 0x113   :  { %v737_v8 = vpop.eup %736  ;;  %v646_v52 = vadd.f32 1.0, %v735_v62  ;;  %752 = vpow2.f32 %v718_v51  ;;  %v720_v31 = vmul.f32 -1.442695, %v587_v45 }
 0x114   :  { %v645_v58 = vadd.f32 1.0, %v737_v8  ;;  %754 = vpow2.f32 %v721_v6  ;;  %v590_v4 = vadd.f32 %v1563_v36, %v572_v43  ;;  %v589_v34 = vadd.f32 %v1563_v36, %v571_v49 }
 0x115   :  { %756 = vrcp.f32 %v646_v52  ;;  %v558_v28 = vpop.xlane.xlu1 %557  ;;  %v555_v54 = vpop.xlane.xlu0 %554 }
 0x116   :  { %v739_v63 = vpop.eup %738  ;;  %758 = vrcp.f32 %v645_v58  ;;  %v723_v0 = vmul.f32 -1.442695, %v590_v4  ;;  %v722_v14 = vmul.f32 -1.442695, %v589_v34  ;;  %v574_v13 = vadd.f32 %v558_v28, %v434_v24 }
 0x117   :  { %v741_v59 = vpop.eup %740  ;;  %v648_v55 = vadd.f32 1.0, %v739_v63  ;;  %760 = vpow2.f32 %v720_v31  ;;  %v573_v56 = vadd.f32 %v555_v54, %v433_v25 }
 0x118   :  { %v743_v27 = vpop.eup %742  ;;  %691 = vst.msk [vmem:[%s1672_s3 + $0x8] sm:$0xff] %vm689_vm0, %v741_v59  ;;  %762 = vpow2.f32 %v723_v0  ;;  %v592_v19 = vadd.f32 %v1563_v36, %v574_v13 }
 0x119   :  { %v745_v35 = vpop.eup %744  ;;  %690 = vst.msk [vmem:[%s1672_s3] sm:$0xff] %vm689_vm0, %v743_v27  ;;  %764 = vrcp.f32 %v648_v55  ;;  %v591_v57 = vadd.f32 %v1563_v36, %v573_v56 }
 0x11a   :  { %v747_v60 = vpop.eup %746  ;;  %v647_v15 = vadd.f32 1.0, %v745_v35  ;;  %766 = vpow2.f32 %v722_v14  ;;  %v725_v17 = vmul.f32 -1.442695, %v592_v19 }
 0x11b   :  { %v749_v16 = vpop.eup %748  ;;  %v650_v23 = vadd.f32 1.0, %v747_v60  ;;  %v724_v3 = vmul.f32 -1.442695, %v591_v57 }
 0x11c   :  { %v751_v61 = vpop.eup %750  ;;  %693 = vst.msk [vmem:[%s1672_s3 + $0x18] sm:$0xff] %vm689_vm0, %v749_v16  ;;  %768 = vrcp.f32 %v647_v15 }
 0x11d   :  { %v753_v1 = vpop.eup %752  ;;  %692 = vst.msk [vmem:[%s1672_s3 + $0x10] sm:$0xff] %vm689_vm0, %v751_v61  ;;  %770 = vrcp.f32 %v650_v23 }
 0x11e   :  { %v755_v36 = vpop.eup %754  ;;  %v649_v29 = vadd.f32 1.0, %v753_v1  ;;  %772 = vpow2.f32 %v725_v17 }
 0x11f   :  { %v757_v2 = vpop.eup %756  ;;  %v652_v40 = vadd.f32 1.0, %v755_v36  ;;  %774 = vpow2.f32 %v724_v3 }
 0x120   :  { %v759_v38 = vpop.eup %758  ;;  %695 = vst.msk [vmem:[%s1672_s3 + $0x28] sm:$0xff] %vm689_vm0, %v757_v2  ;;  %776 = vrcp.f32 %v649_v29 }
 0x121   :  { %v761_v11 = vpop.eup %760  ;;  %694 = vst.msk [vmem:[%s1672_s3 + $0x20] sm:$0xff] %vm689_vm0, %v759_v38  ;;  %778 = vrcp.f32 %v652_v40 }
 0x122   :  { %v763_v22 = vpop.eup %762  ;;  %v651_v42 = vadd.f32 1.0, %v761_v11 }
 0x123   :  { %v765_v39 = vpop.eup %764  ;;  %v654_v32 = vadd.f32 1.0, %v763_v22 }
 0x124   :  { %v767_v46 = vpop.eup %766  ;;  %697 = vst.msk [vmem:[%s1672_s3 + $0x38] sm:$0xff] %vm689_vm0, %v765_v39  ;;  %780 = vrcp.f32 %v651_v42 }
 0x125   :  { %782 = vrcp.f32 %v654_v32  ;;  %v653_v20 = vadd.f32 1.0, %v767_v46 }
 0x126   :  { %v769_v12 = vpop.eup %768 }
 0x127   :  { %v771_v21 = vpop.eup %770  ;;  %696 = vst.msk [vmem:[%s1672_s3 + $0x30] sm:$0xff] %vm689_vm0, %v769_v12  ;;  %784 = vrcp.f32 %v653_v20 }
 0x128   :  { %v773_v30 = vpop.eup %772  ;;  %699 = vst.msk [vmem:[%s1672_s3 + $0x48] sm:$0xff] %vm689_vm0, %v771_v21 }
 0x129   :  { %v775_v48 = vpop.eup %774  ;;  %v656_v50 = vadd.f32 1.0, %v773_v30 }
 0x12a   :  { %v777_v10 = vpop.eup %776  ;;  %v655_v7 = vadd.f32 1.0, %v775_v48 }
 0x12b   :  { %v779_v37 = vpop.eup %778  ;;  %698 = vst.msk [vmem:[%s1672_s3 + $0x40] sm:$0xff] %vm689_vm0, %v777_v10  ;;  %786 = vrcp.f32 %v656_v50 }
 0x12c   :  { %701 = vst.msk [vmem:[%s1672_s3 + $0x58] sm:$0xff] %vm689_vm0, %v779_v37  ;;  %788 = vrcp.f32 %v655_v7 }
 0x12e   :  { %v781_v51 = vpop.eup %780 }
 0x12f   :  { %v783_v18 = vpop.eup %782  ;;  %700 = vst.msk [vmem:[%s1672_s3 + $0x50] sm:$0xff] %vm689_vm0, %v781_v51 }
 0x130   :  { %703 = vst.msk [vmem:[%s1672_s3 + $0x68] sm:$0xff] %vm689_vm0, %v783_v18 }
 0x131   :  { %v785_v41 = vpop.eup %784 }
 0x132   :  { %702 = vst.msk [vmem:[%s1672_s3 + $0x60] sm:$0xff] %vm689_vm0, %v785_v41 }
 0x135   :  { %v787_v26 = vpop.eup %786 }
 0x136   :  { %v789_v53 = vpop.eup %788  ;;  %705 = vst.msk [vmem:[%s1672_s3 + $0x78] sm:$0xff] %vm689_vm0, %v787_v26 }
 0x137   :  { %704 = vst.msk [vmem:[%s1672_s3 + $0x70] sm:$0xff] %vm689_vm0, %v789_v53 }

</bundles_post_ra>
